<compile_context>
chip_gen: v5e
topology: v5e:2x2
jax: 0.10.0
libtpu: 0.0.40
codegen_flags: <defaults>
</compile_context>

<pallas_src>
import jax
import jax.numpy as jnp
from jax import lax
from jax.experimental import pallas as pl
from jax.experimental.pallas import tpu as pltpu
import numpy as np

_NEG_FILL = -1e30  # finite "-inf": keeps edge-tile tails / reductions NaN-free


def _round_up(x: int, m: int) -> int:
    return ((x + m - 1) // m) * m


# --------------------------------------------------------------------------- #
# Kernel 1: streaming online logsumexp over class tiles                        #
# --------------------------------------------------------------------------- #
def _make_lse_kernel(*, C, TB, TC, mask_cols):
    def kernel(logits_ref, out_ref, m_sc, l_sc):
        k = pl.program_id(1)           # class tile ("arbitrary", reduction, last)
        nk = pl.num_programs(1)

        @pl.when(k == 0)
        def _():
            m_sc[...] = jnp.full_like(m_sc, _NEG_FILL)
            l_sc[...] = jnp.zeros_like(l_sc)

        x = logits_ref[...].astype(jnp.float32)               # [TB, TC]
        if mask_cols:
            # partial class-edge block: tail is uninitialized -> mask with a
            # SELECT (k-invariant iota vs. scalar; no full-tile broadcast add).
            lane = lax.broadcasted_iota(jnp.int32, (TB, TC), 1)
            x = jnp.where(lane < (C - k * TC), x, _NEG_FILL)

        m_prev = m_sc[...]
        m_new = jnp.maximum(m_prev, jnp.max(x, axis=-1, keepdims=True))
        l_sc[...] = (l_sc[...] * jnp.exp(m_prev - m_new)
                     + jnp.sum(jnp.exp(x - m_new), axis=-1, keepdims=True))
        m_sc[...] = m_new

        @pl.when(k == nk - 1)
        def _():
            out_ref[...] = m_sc[...] + jnp.log(l_sc[...])     # [TB, 1]

    return kernel


# --------------------------------------------------------------------------- #
# Kernel 2: per-row redundancy penalty  ||attn attn^T - I||_F^2                #
#            = ||G||^2 - 2*tr(G) + A                                           #
# --------------------------------------------------------------------------- #
def _make_penalty_kernel(*, A, S):
    def kernel(attn_ref, out_ref):
        attn = attn_ref[...].astype(jnp.float32)              # [TBp, A, S]
        # tr(G) = sum(attn^2)
        sumsq = jnp.sum(jnp.sum(attn * attn, axis=2), axis=1, keepdims=True)  # [TBp,1]

        if A >= 8:
            # MXU is otherwise idle: batched gram via dot_general.
            g = lax.dot_general(attn, attn,
                                dimension_numbers=(((2,), (2,)), ((0,), (0,))),
                                preferred_element_type=jnp.float32)  # [TBp, A, A]
            gram_sq = jnp.sum(jnp.sum(g * g, axis=2), axis=1, keepdims=True)
        else:
            # Small A: a handful of VPU multiply+reduce pairs (symmetry halves it).
            gram_sq = jnp.zeros_like(sumsq)
            for a in range(A):
                xa = attn[:, a, :]                             # [TBp, S]
                for c in range(a, A):
                    g = jnp.sum(xa * attn[:, c, :], axis=-1, keepdims=True)
                    w = 1.0 if c == a else 2.0
                    gram_sq = gram_sq + w * (g * g)

        out_ref[...] = gram_sq - 2.0 * sumsq + jnp.float32(A)  # [TBp, 1]

    return kernel


# --------------------------------------------------------------------------- #
# Wrapper                                                                      #
# --------------------------------------------------------------------------- #
def cross_entropy_wp(model_output, label, attn_matrix, penalty=0.0,
                     *, block_b=256, block_c=4096):
    """JAX/Pallas equivalent of CrossEntropyWP.forward."""
    B, C = model_output.shape
    _, A, S = attn_matrix.shape

    # Batch tile: 8-aligned; keep >= 2 batch tiles when possible (v7x megacore).
    TB = min(int(block_b), _round_up(max(1, (B + 1) // 2), 8))
    # Class tile: lane-aligned; inputs are NOT padded -> partial edge blocks.
    TC = min(int(block_c), _round_up(C, 128))

    grid = (pl.cdiv(B, TB), pl.cdiv(C, TC))
    mask_cols = (C % TC) != 0

    itemsize = jnp.dtype(model_output.dtype).itemsize
    vmem_bytes = int(2 * TB * TC * itemsize        # double-buffered logits tiles
                     + 2 * TB * 4                  # output block (double-buffered)
                     + 2 * TB * 4 * 2) + (2 << 20)  # scratch m,l + headroom
    vmem_bytes = min(max(vmem_bytes, 4 << 20), 64 << 20)

    # -------- CE: streamed logsumexp (HBM-bandwidth-bound part) -------------
    lse = pl.pallas_call(
        _make_lse_kernel(C=C, TB=TB, TC=TC, mask_cols=mask_cols),
        out_shape=jax.ShapeDtypeStruct((B, 1), jnp.float32),
        grid_spec=pltpu.PrefetchScalarGridSpec(
            num_scalar_prefetch=0,
            grid=grid,
            in_specs=[pl.BlockSpec((TB, TC), lambda i, k: (i, k))],   # logits
            out_specs=pl.BlockSpec((TB, 1), lambda i, k: (i, 0)),
            scratch_shapes=[pltpu.VMEM((TB, 1), jnp.float32)] * 2,    # m, l
        ),
        compiler_params=pltpu.CompilerParams(
            dimension_semantics=("parallel", "arbitrary"),
            vmem_limit_bytes=vmem_bytes,
        ),
    )(model_output)

    # Label pick as a tiny XLA gather (cheaper than a per-class-tile in-kernel pick).
    picked = jnp.take_along_axis(model_output.astype(jnp.float32),
                                 label.astype(jnp.int32)[:, None], axis=1)  # [B,1]
    ce = jnp.mean(lse - picked)

    # -------- penalty: separate tiny kernel (keeps attn out of the logits
    #          pipeline's VMEM budget; attn kept as [B, A, S], no S padding) ---
    TBp = min(256, _round_up(max(1, (B + 1) // 2), 8))
    attn_itemsize = jnp.dtype(attn_matrix.dtype).itemsize
    pen_vmem = int(2 * TBp * A * S * attn_itemsize + 2 * TBp * 4) + (1 << 20)
    pen_vmem = min(max(pen_vmem, 2 << 20), 64 << 20)

    pen_rows = pl.pallas_call(
        _make_penalty_kernel(A=A, S=S),
        out_shape=jax.ShapeDtypeStruct((B, 1), jnp.float32),
        grid_spec=pltpu.PrefetchScalarGridSpec(
            num_scalar_prefetch=0,
            grid=(pl.cdiv(B, TBp),),
            in_specs=[pl.BlockSpec((TBp, A, S), lambda i: (i, 0, 0))],
            out_specs=pl.BlockSpec((TBp, 1), lambda i: (i, 0)),
        ),
        compiler_params=pltpu.CompilerParams(
            dimension_semantics=("parallel",),
            vmem_limit_bytes=pen_vmem,
        ),
    )(attn_matrix)

    return ce + jnp.float32(penalty) * jnp.mean(pen_rows)


def cross_entropy_wp_ref(model_output, label, attn_matrix, penalty=0.0):
    """Pure-JAX reference for validation."""
    logits = model_output.astype(jnp.float32)
    lse = jax.scipy.special.logsumexp(logits, axis=-1)
    picked = jnp.take_along_axis(logits, label.astype(jnp.int32)[:, None], axis=-1)[:, 0]
    ce = jnp.mean(lse - picked)
    a = attn_matrix.astype(jnp.float32)
    gram = jnp.einsum("bas,bcs->bac", a, a)
    A = gram.shape[1]
    diff = gram - jnp.eye(A, dtype=jnp.float32)[None]
    pen = jnp.mean(jnp.sum(diff * diff, axis=(1, 2)))
    return ce + penalty * pen


if __name__ == "__main__":
    key = jax.random.PRNGKey(0)

    # ---- config 1: aligned-ish shapes, small-A (VPU pair-loop) path ---------
    B, C, A, S = 16, 384, 4, 32
    penalty = 0.1
    k1, k2, k3, k4, k5, k6 = jax.random.split(key, 6)
    logits = jax.random.normal(k1, (B, C), dtype=jnp.float32)
    label = jax.random.randint(k2, (B,), 0, C, dtype=jnp.int32)
    attn = jax.random.normal(k3, (B, A, S), dtype=jnp.float32) * 0.1

    ref = cross_entropy_wp_ref(logits, label, attn, penalty=penalty)
    out = jax.block_until_ready(
        cross_entropy_wp(logits, label, attn, penalty=penalty))
    np.testing.assert_allclose(np.asarray(out), np.asarray(ref), rtol=1e-5, atol=1e-5)

    # same config, forced multi-class-tile grid (exercises online logsumexp)
    out_small = jax.block_until_ready(
        cross_entropy_wp(logits, label, attn, penalty=penalty,
                         block_b=8, block_c=128))
    np.testing.assert_allclose(np.asarray(out_small), np.asarray(ref),
                               rtol=1e-5, atol=1e-5)

    # ---- config 2: ragged shapes (partial batch + class edge blocks) and the
    #      A>=8 dot_general gram path ------------------------------------------
    B2, C2, A2, S2 = 13, 307, 8, 24
    logits2 = jax.random.normal(k4, (B2, C2), dtype=jnp.float32)
    label2 = jax.random.randint(k5, (B2,), 0, C2, dtype=jnp.int32)
    attn2 = jax.random.normal(k6, (B2, A2, S2), dtype=jnp.float32) * 0.1

    ref2 = cross_entropy_wp_ref(logits2, label2, attn2, penalty=penalty)
    out2 = jax.block_until_ready(
        cross_entropy_wp(logits2, label2, attn2, penalty=penalty))
    np.testing.assert_allclose(np.asarray(out2), np.asarray(ref2),
                               rtol=1e-5, atol=1e-5)

    print("KERNEL_OK")
</pallas_src>

<mosaic_0001>
module attributes {stable_mosaic.version = 11 : i64} {
  func.func @kernel(%arg0: i32, %arg1: i32, %arg2: memref<8x384xf32, #tpu.memory_space<vmem>>, %arg3: memref<8x1xf32, #tpu.memory_space<vmem>>, %arg4: memref<8x1xf32, #tpu.memory_space<vmem>>, %arg5: memref<8x1xf32, #tpu.memory_space<vmem>>) attributes {dimension_semantics = [#tpu.dimension_semantics<parallel>, #tpu.dimension_semantics<arbitrary>], iteration_bounds = array<i64: 2, 1>, scalar_prefetch = 0 : i64, scratch_operands = 2 : i64, tpu.core_type = #tpu.core_type<tc>, window_params = [{transform_indices = @transform_0, window_bounds = array<i64: 8, 384>}, {transform_indices = @transform_1, window_bounds = array<i64: 8, 1>}]} {
    %c0_i32 = arith.constant 0 : i32
    %0 = arith.cmpi eq, %arg1, %c0_i32 : i32
    %1 = arith.extui %0 : i1 to i32
    %c0_i32_0 = arith.constant 0 : i32
    %2 = arith.cmpi ne, %1, %c0_i32_0 : i32
    scf.if %2 {
      %cst_13 = arith.constant -1.000000e+30 : f32
      %23 = vector.broadcast %cst_13 : f32 to vector<8x1xf32>
      %c0_14 = arith.constant 0 : index
      %c0_15 = arith.constant 0 : index
      %24 = vector.load %arg4[%c0_14, %c0_15] : memref<8x1xf32, #tpu.memory_space<vmem>>, vector<8x1xf32>
      tpu.vector_store %arg4[%c0_14, %c0_15], %23 {strides = array<i32>} : memref<8x1xf32, #tpu.memory_space<vmem>>, vector<8x1xf32>,
      %cst_16 = arith.constant 0.000000e+00 : f32
      %25 = vector.broadcast %cst_16 : f32 to vector<8x1xf32>
      %c0_17 = arith.constant 0 : index
      %c0_18 = arith.constant 0 : index
      %26 = vector.load %arg5[%c0_17, %c0_18] : memref<8x1xf32, #tpu.memory_space<vmem>>, vector<8x1xf32>
      tpu.vector_store %arg5[%c0_17, %c0_18], %25 {strides = array<i32>} : memref<8x1xf32, #tpu.memory_space<vmem>>, vector<8x1xf32>,
    } else {
    }
    %c0 = arith.constant 0 : index
    %c0_1 = arith.constant 0 : index
    %3 = vector.load %arg2[%c0, %c0_1] : memref<8x384xf32, #tpu.memory_space<vmem>>, vector<8x384xf32>
    %c0_2 = arith.constant 0 : index
    %c0_3 = arith.constant 0 : index
    %4 = vector.load %arg4[%c0_2, %c0_3] : memref<8x1xf32, #tpu.memory_space<vmem>>, vector<8x1xf32>
    %cst = arith.constant dense<0xFF800000> : vector<8xf32>
    %5 = vector.multi_reduction <maximumf>, %3, %cst [1] : vector<8x384xf32> to vector<8xf32>
    %6 = vector.shape_cast %5 : vector<8xf32> to vector<8x1xf32>
    %7 = arith.maximumf %4, %6 : vector<8x1xf32>
    %c0_4 = arith.constant 0 : index
    %c0_5 = arith.constant 0 : index
    %8 = vector.load %arg5[%c0_4, %c0_5] : memref<8x1xf32, #tpu.memory_space<vmem>>, vector<8x1xf32>
    %9 = arith.subf %4, %7 : vector<8x1xf32>
    %10 = math.exp %9 : vector<8x1xf32>
    %11 = arith.mulf %8, %10 : vector<8x1xf32>
    %12 = vector.broadcast %7 : vector<8x1xf32> to vector<8x384xf32>
    %13 = arith.subf %3, %12 : vector<8x384xf32>
    %14 = math.exp %13 : vector<8x384xf32>
    %cst_6 = arith.constant dense<0.000000e+00> : vector<8xf32>
    %15 = vector.multi_reduction <add>, %14, %cst_6 [1] : vector<8x384xf32> to vector<8xf32>
    %16 = vector.shape_cast %15 : vector<8xf32> to vector<8x1xf32>
    %17 = arith.addf %11, %16 : vector<8x1xf32>
    %c0_7 = arith.constant 0 : index
    %c0_8 = arith.constant 0 : index
    %18 = vector.load %arg5[%c0_7, %c0_8] : memref<8x1xf32, #tpu.memory_space<vmem>>, vector<8x1xf32>
    tpu.vector_store %arg5[%c0_7, %c0_8], %17 {strides = array<i32>} : memref<8x1xf32, #tpu.memory_space<vmem>>, vector<8x1xf32>,
    %c0_9 = arith.constant 0 : index
    %c0_10 = arith.constant 0 : index
    %19 = vector.load %arg4[%c0_9, %c0_10] : memref<8x1xf32, #tpu.memory_space<vmem>>, vector<8x1xf32>
    tpu.vector_store %arg4[%c0_9, %c0_10], %7 {strides = array<i32>} : memref<8x1xf32, #tpu.memory_space<vmem>>, vector<8x1xf32>,
    %c0_i32_11 = arith.constant 0 : i32
    %20 = arith.cmpi eq, %arg1, %c0_i32_11 : i32
    %21 = arith.extui %20 : i1 to i32
    %c0_i32_12 = arith.constant 0 : i32
    %22 = arith.cmpi ne, %21, %c0_i32_12 : i32
    scf.if %22 {
      %c0_13 = arith.constant 0 : index
      %c0_14 = arith.constant 0 : index
      %23 = vector.load %arg4[%c0_13, %c0_14] : memref<8x1xf32, #tpu.memory_space<vmem>>, vector<8x1xf32>
      %c0_15 = arith.constant 0 : index
      %c0_16 = arith.constant 0 : index
      %24 = vector.load %arg5[%c0_15, %c0_16] : memref<8x1xf32, #tpu.memory_space<vmem>>, vector<8x1xf32>
      %25 = math.log %24 : vector<8x1xf32>
      %26 = arith.addf %23, %25 : vector<8x1xf32>
      %c0_17 = arith.constant 0 : index
      %c0_18 = arith.constant 0 : index
      %27 = vector.load %arg3[%c0_17, %c0_18] : memref<8x1xf32, #tpu.memory_space<vmem>>, vector<8x1xf32>
      tpu.vector_store %arg3[%c0_17, %c0_18], %26 {strides = array<i32>} : memref<8x1xf32, #tpu.memory_space<vmem>>, vector<8x1xf32>,
    } else {
    }
    return
  }
  func.func @transform_0(%arg0: i32, %arg1: i32) -> (i32, i32) {
    %c0_i32 = arith.constant 0 : i32
    return %arg0, %arg1 : i32, i32
  }
  func.func @transform_1(%arg0: i32, %arg1: i32) -> (i32, i32) {
    %c0_i32 = arith.constant 0 : i32
    %c0_i32_0 = arith.constant 0 : i32
    return %arg0, %c0_i32 : i32, i32
  }
}

</mosaic_0001>

<bundles_post_ra>
// kernel: tpu_custom_call.1
= control target key start
LH: loop header
LB: loop body
LE: loop exit
PB: predicated region body
PF: predicated region fallthrough
CT: control target
= control target key end

     0   :  { %6 = vsyncpa [#allocation5], 0  ;;  %s543_s0 = inlined_call_operand.hbm [shape: f32[16,384], index: 0, kind: input, shape index: {}]   ;;  %s544_s1 = inlined_call_operand.vmem [shape: f32[16,1], index: 1, kind: output, shape index: {}]  }
   0x1   :  { %8 = vsyncpa [#allocation5 + $0x1], 0  ;;  %s456_s6 = smov 0   ;;  %s458_s7 = smov 0  }
   0x2   :  { %s460_s8 = smov 0   ;;  %s462_s9 = smov 0  }
   0x3   :  { %s464_s10 = smov 0   ;;  %s466_s11 = smov 0  }
   0x4 LB: > { %s280_s12 = sadd.s32 4294967295, %s441_s11   ;;  %s26_s13 = sadd.s32 1, %s437_s10  ;;  %s441_s11 = sphi %s466_s11, %s14_s11   ;;  %s437_s10 = sphi %s464_s10, %s550_s10   ;;  %s433_s9 = sphi %s462_s9, %s549_s9   ;;  %s429_s8 = sphi %s460_s8, %s548_s8   ;;  %s425_s7 = sphi %s458_s7, %s547_s7   ;;  %s421_s6 = sphi %s456_s6, %s546_s6  }
   0x5   : > { %p28_p0 = scmp.ge.s32.totalorder %s26_s13, 2  ;;  %s35_s14 = sadd.s32 1, %s429_s8 }
   0x6   : > { %p42_p1 = scmp.ne.s32.totalorder %s429_s8, %s425_s7  ;;  %p43_p2 = scmp.eq.s32.totalorder %s441_s11, 0 }
   0x7   : > { %s552_s13 = smov (%p28_p0, %s26_s13), 0  ;;  %p48_p4 = scmp.ne.s32.totalorder %s425_s7, %s421_s6 }
   0x8   : > { %p44_p3 = por %p43_p2, %p42_p1  ;;  %s30_s15 = ssub.s32 %s437_s10, %s552_s13 }
   0x9   : > { %p49_p5 = scmp.eq.s32.totalorder %s280_s12, 0  ;;  %p33_p6 = scmp.eq.s32.totalorder %s30_s15, 0 }
   0xa   : > { %p298_p8 = scmp.lt.s32.totalorder %s441_s11, 2  ;;  %s98_s18 = sand.u32 1, %s429_s8  }
   0xb   : > { %p495_p7 = por %p49_p5, %p48_p4  ;;  %s290_s19 = smul.u32 24, %s437_s10 }
   0xc   : > { %s501_s17 = scalar_select %p33_p6, %s429_s8, %s35_s14  }
   0xd   : > { %s289_s20 = smul.u32 24, %s98_s18  ;;  %s109_s23 = scalar_lea.hbm %s543_s0, %s290_s19 }
   0xe   : > { %p295_p9 = pnand %p298_p8, %p44_p3  ;;  %s111_s24 = sshll.u32 %s109_s23, 4  ;;  %s112_s24 = int_to_ptr.hbm [resolvable:$true] %s111_s24 }
   0xf   : > { %s102_s25 = scalar_lea.vmem [#allocation4], %s289_s20  ;;  %s99_s27 = scalar_lea.sflag [#allocation5], %s98_s18 }
  0x10   : > { %s113_s26 = sshll.u32 %s102_s25, 4  ;;  %p285_p10 = scmp.ge.s32.totalorder %s441_s11, 1  ;;  %s114_s26 = int_to_ptr.vmem [resolvable:$true] %s113_s26 }
  0x11   : > { %297 = dma.hbm_to_vmem [thread:$0]  (!%p295_p9), %s112_s24, 384, %s114_s26, %s99_s27  }
  0x12   : > { %p118_p11 = scmp.lt.s32.totalorder %s441_s11, 3 }
  0x14   : > { %p119_p12 = pnand %p285_p10, %p118_p11 }
  0x15   : > { %s124_s28 = sand.u32 (!%p119_p12), 1, %s425_s7  }
  0x16   : > { %122 = sbr.rel (%p119_p12) target bundleno = 420 (0x1a4), region = 24  ;;  %s125_s30 = scalar_lea.sflag (!%p119_p12), [#allocation5], %s124_s28 }
  0x17   : > { %s291_s29 = smul.u32 (!%p119_p12), 24, %s124_s28 }
  0x19   : > { %s128_s2 = scalar_lea.vmem (!%p119_p12), [#allocation4], %s291_s29 }
  0x1b   : > { %416 = dma.done.wait (%p495_p7), %s125_s30, 384  }
  0x1c   : > { %418 = vsyncadd (%p495_p7), %s125_s30, 4294966912  ;;  %vm156_vm0 = vcmask 7168   ;;  %v443_v0 = vmov -1e+30   ;;  %v159_v1 = vld [vmem:[%s128_s2] sm:$0xff]  ;;  %v160_v2 = vld [vmem:[%s128_s2 + $0x8] sm:$0xff] }
  0x1d   : > { %157 = vst.msk [vmem:[#allocation2] sm:$0xff] %vm156_vm0, %v443_v0  ;;  %v161_v3 = vld [vmem:[%s128_s2 + $0x10] sm:$0xff]  ;;  %v163_v4 = vmax.f32 %v159_v1, %v160_v2  ;;  %v444_v6 = vmov 0   ;;  %v445_v7 = vmov 0.0   ;;  %p148_p13 = scmp.lt.s32.totalorder %s433_s9, 1 }
  0x1e   : > { %350 = vset.pattern.permute.xlu0 %v444_v6  ;;  %158 = vst.msk [vmem:[#allocation3] sm:$0xff] %vm156_vm0, %v445_v7 }
  0x1f   : > { %v164_v5 = vmax.f32 %v163_v4, %v161_v3  ;;  %s554_s9 = smov (!%p148_p13, %s433_s9), 1 }
  0x20   : > { %s286_s3 = sshll.u32 %s554_s9, 3 }
  0x21   : > { %165 = vmax.xlane.f32.xlu0 %v164_v5  ;;  %s151_s6 = scalar_lea.vmem %s544_s1, %s286_s3 }
  0x24   : > { %v162_v8 = vld [vmem:[#allocation2] sm:$0xff] }
  0x25   : > { %v168_v26 = vld [vmem:[#allocation3] sm:$0xff] }
  0x94   : > { %v166_v9 = vpop.xlane.xlu0 %165 }
  0x95   : > { %v167_v10 = vmax.f32 %v162_v8, %v166_v9 }
  0x97   : > { %v169_v11 = vsub.f32 %v162_v8, %v167_v10  ;;  %194 = vst.msk [vmem:[#allocation2] sm:$0xff] %vm156_vm0, %v167_v10  ;;  %175 = vperm.xlu0 %350, %v167_v10  }
  0x99   : > { %v170_v24 = vmul.f32 1.442695, %v169_v11 }
  0x9e   : > { %v198_v33 = vld [vmem:[#allocation2] sm:$0xff] }
 0x109   : > { %v176_v12 = vpop.permute.xlu0 %175 }
 0x10a   : > { %v178_v13 = vsub.f32 %v159_v1, %v176_v12  ;;  %v179_v14 = vsub.f32 %v160_v2, %v176_v12  ;;  %v180_v15 = vsub.f32 %v161_v3, %v176_v12 }
 0x10c   : > { %v181_v16 = vmul.f32 1.442695, %v178_v13  ;;  %v183_v17 = vmul.f32 1.442695, %v179_v14  ;;  %v185_v18 = vmul.f32 1.442695, %v180_v15 }
 0x10e   : > { %351 = vpow2.f32 %v181_v16 }
 0x10f   : > { %353 = vpow2.f32 %v183_v17 }
 0x110   : > { %355 = vpow2.f32 %v185_v18 }
 0x111   : > { %357 = vpow2.f32 %v170_v24 }
 0x114   : > { %v352_v19 = vpop.eup %351 }
 0x115   : > { %v354_v20 = vpop.eup %353 }
 0x116   : > { %v187_v21 = vadd.f32 %v354_v20, %v352_v19  ;;  %v356_v22 = vpop.eup %355 }
 0x117   : > { %v358_v25 = vpop.eup %357 }
 0x118   : > { %v188_v23 = vadd.f32 %v356_v22, %v187_v21  ;;  %v172_v27 = vmul.f32 %v358_v25, %v168_v26 }
 0x11a   : > { %189 = vadd.xlane.f32.xlu1 %v188_v23 }
 0x18d   : > { %v190_v28 = vpop.xlane.xlu1 %189 }
 0x18e   : > { %v191_v29 = vadd.f32 %v190_v28, %v172_v27 }
 0x190   : > { %193 = vst.msk [vmem:[#allocation3] sm:$0xff] %vm156_vm0, %v191_v29 }
 0x197   : > { %v199_v30 = vld [vmem:[#allocation3] sm:$0xff] }
 0x198   : > { %359 = vlog2.f32 %v199_v30 }
 0x19e   : > { %v360_v31 = vpop.eup %359 }
 0x19f   : > { %v201_v32 = vmul.f32 0.6931472, %v360_v31 }
 0x1a1   : > { %v202_v34 = vadd.f32 %v201_v32, %v198_v33 }
 0x1a3   : > { %203 = vst.msk [vmem:[%s151_s6] sm:$0xff] %vm156_vm0, %v202_v34 }
 0x1a4 PF: > { %s14_s11 = sadd.s32 1, %s441_s11   ;;  %s546_s6 = smov %s425_s7 }
 0x1a5   : > { %p11_p0 = scmp.ge.s32.totalorder %s14_s11, 4   ;;  %s547_s7 = smov %s429_s8 }
 0x1a6   : > { %s548_s8 = smov %s501_s17  ;;  %s549_s9 = smov %s437_s10 }
 0x1a7   : > { %s550_s10 = smov %s552_s13  ;;  %13 = sbr.rel (!%p11_p0) target bundleno = 4 (0x4), region = 72 }
 0x1ac   :  { %223 = vsyncpa [#allocation5], 1 }
 0x1ad   :  { %225 = vsyncpa [#allocation5 + $0x1], 1 }

</bundles_post_ra>
